<compile_context>
chip_gen: v6e
topology: v6e:2x2x1
jax: 0.10.0
libtpu: 0.0.40
codegen_flags: <defaults>
</compile_context>

<pallas_src>
import jax
import jax.numpy as jnp
from jax.experimental import pallas as pl
from jax.experimental.pallas import tpu as pltpu


def _conv_bias_elu_kernel(xcol_ref, w_ref, b_ref, out_ref):
    """One fused step:  out = ELU(W @ x_col + b).

    xcol_ref: (Ci*K*K, N_blk)   im2col'd input, lane-dense (N_blk % 128 == 0)
    w_ref   : (Co, Ci*K*K)      conv weight, flattened over (ci, kh, kw)
    b_ref   : (Co, 1)           conv bias (lane-broadcast)
    out_ref : (Co, N_blk)       output slab (lane-dense, unmasked stores)
    """
    # Single MXU matmul, contraction depth Ci*K*K, accumulate in f32; bias folded into
    # the same elementwise pass.
    acc = jnp.dot(w_ref[...], xcol_ref[...], preferred_element_type=jnp.float32)
    acc = acc + b_ref[...]

    # ELU (alpha = 1):  x for x > 0 else exp(x) - 1.  The min() clamp keeps exp()
    # finite for the discarded positive branch.
    # TODO(synk): switch to jnp.expm1 for extra precision near 0 once confirmed in the
    # Mosaic lowering; exp(x)-1 matches nn.ELU well within the 1e-4 tolerance here.
    neg = jnp.exp(jnp.minimum(acc, 0.0)) - 1.0
    out_ref[...] = jnp.where(acc > 0, acc, neg).astype(out_ref.dtype)


def conv_module_forward(x, weight, bias, *, stride=1, padding=0, num_lane_blocks=1):
    """Forward of ConvModule with default config (identity norm/dropout/pooling, ELU).

    num_lane_blocks: 1 collapses the whole forward into a single grid step (best on
    single-TC v5e/v6e).  Set to 2 on v7x for larger instantiations so both TensorCores
    get work (lane axis is split; each block stays a multiple of 128 lanes).
    """
    if stride != 1 or padding != 0:
        # TODO(synk): conv_stride != 1 / conv_padding != 0 paths not implemented
        # (module defaults are stride=1, padding=0).
        raise NotImplementedError("only stride=1, padding=0 implemented")
    # TODO(synk): use_norm=True (LayerNorm over (C,H,W)), dropout>0 (Dropout2d) and
    # pooling_size (MaxPool2d) paths are identities in the default config and are not
    # implemented here.

    B, Ci, H, W = x.shape
    Co, Ci_w, K, K2 = weight.shape
    assert Ci == Ci_w and K == K2
    Ho, Wo = H - K + 1, W - K + 1
    CiKK = Ci * K * K
    N = B * Ho * Wo

    # ---- wrapper-side layout plumbing (no compute hoisted, only im2col / padding) ----
    # Patches ordered (ci, kh, kw) to match weight.reshape(Co, Ci*K*K).
    cols = []
    for kh in range(K):
        for kw in range(K):
            cols.append(x[:, :, kh:kh + Ho, kw:kw + Wo])        # (B, Ci, Ho, Wo)
    x_col = jnp.stack(cols, axis=2)                             # (B, Ci, K*K, Ho, Wo)
    x_col = x_col.reshape(B, CiKK, Ho * Wo)                     # (B, Ci*K*K, Ho*Wo)
    x_col = jnp.transpose(x_col, (1, 0, 2)).reshape(CiKK, N)    # fold batch into lanes

    lane_quantum = 128 * num_lane_blocks
    N_pad = ((N + lane_quantum - 1) // lane_quantum) * lane_quantum
    if N_pad != N:
        x_col = jnp.pad(x_col, ((0, 0), (0, N_pad - N)))
    N_blk = N_pad // num_lane_blocks

    w_mat = weight.reshape(Co, CiKK)                            # (Co, Ci*K*K)
    b_col = bias.reshape(Co, 1)                                 # (Co, 1)

    out_flat = pl.pallas_call(
        _conv_bias_elu_kernel,
        out_shape=jax.ShapeDtypeStruct((Co, N_pad), x.dtype),
        grid_spec=pltpu.PrefetchScalarGridSpec(
            num_scalar_prefetch=0,
            grid=(num_lane_blocks,),
            in_specs=[
                pl.BlockSpec((CiKK, N_blk), lambda i: (0, i)),   # x_col lane block
                pl.BlockSpec((Co, CiKK), lambda i: (0, 0)),      # weight (whole)
                pl.BlockSpec((Co, 1), lambda i: (0, 0)),         # bias   (whole)
            ],
            out_specs=pl.BlockSpec((Co, N_blk), lambda i: (0, i)),
        ),
        compiler_params=pltpu.CompilerParams(
            dimension_semantics=("parallel",)),
    )(x_col, w_mat, b_col)

    # Drop the lane padding and restore NCHW.
    out = out_flat[:, :N].reshape(Co, B, Ho, Wo)
    return jnp.transpose(out, (1, 0, 2, 3))


# ------------------------------- main ---------------------------------------
if __name__ == "__main__":
    # ConvModule(in_shape=(4, 16, 16), conv_filters=8, conv_kernel=3) with defaults:
    # ELU activation, bias=True, stride=1, padding=0, no norm / dropout / pooling.
    B, Ci, H, W = 2, 4, 16, 16
    Co, K = 8, 3

    key = jax.random.PRNGKey(0)
    kx, kw, kb = jax.random.split(key, 3)
    x = jax.random.normal(kx, (B, Ci, H, W), dtype=jnp.float32)
    fan_in = Ci * K * K
    weight = (fan_in ** -0.5) * jax.random.normal(kw, (Co, Ci, K, K), jnp.float32)
    bias = 0.1 * jax.random.normal(kb, (Co,), jnp.float32)

    out = conv_module_forward(x, weight, bias)
    out = jax.block_until_ready(out)

    # Pure-JAX reference: ELU(Conv2d(x)).
    ref = jax.lax.conv_general_dilated(
        x, weight, window_strides=(1, 1), padding="VALID",
        dimension_numbers=("NCHW", "OIHW", "NCHW"))
    ref = jax.nn.elu(ref + bias.reshape(1, Co, 1, 1))

    assert out.shape == (B, Co, H - K + 1, W - K + 1)
    assert jnp.allclose(out, ref, atol=1e-4, rtol=1e-4), "mismatch vs JAX reference"

    print("KERNEL_OK")
</pallas_src>

<mosaic_0001>
module attributes {stable_mosaic.version = 11 : i64} {
  func.func @_conv_bias_elu_kernel(%arg0: i32, %arg1: memref<36x512xf32, #tpu.memory_space<vmem>>, %arg2: memref<8x36xf32, #tpu.memory_space<vmem>>, %arg3: memref<8x1xf32, #tpu.memory_space<vmem>>, %arg4: memref<8x512xf32, #tpu.memory_space<vmem>>) attributes {dimension_semantics = [#tpu.dimension_semantics<parallel>], iteration_bounds = array<i64: 1>, scalar_prefetch = 0 : i64, scratch_operands = 0 : i64, tpu.core_type = #tpu.core_type<tc>, window_params = [{transform_indices = @transform_0, window_bounds = array<i64: 36, 512>}, {pipeline_mode = #tpu.pipeline_mode<synchronous>, transform_indices = @transform_1, window_bounds = array<i64: 8, 36>}, {pipeline_mode = #tpu.pipeline_mode<synchronous>, transform_indices = @transform_2, window_bounds = array<i64: 8, 1>}, {transform_indices = @transform_3, window_bounds = array<i64: 8, 512>}]} {
    %c0 = arith.constant 0 : index
    %c0_0 = arith.constant 0 : index
    %0 = vector.load %arg2[%c0, %c0_0] : memref<8x36xf32, #tpu.memory_space<vmem>>, vector<8x36xf32>
    %c0_1 = arith.constant 0 : index
    %c0_2 = arith.constant 0 : index
    %1 = vector.load %arg1[%c0_1, %c0_2] : memref<36x512xf32, #tpu.memory_space<vmem>>, vector<36x512xf32>
    %cst = arith.constant dense<0.000000e+00> : vector<8x512xf32>
    %2 = tpu.matmul %0, %1, %cst {dimension_numbers = #tpu.dot_dimension_numbers<[1], [0], [0], [1], [0, 0, 1, 1], [], []>} : vector<8x36xf32>, vector<36x512xf32>, vector<8x512xf32> -> vector<8x512xf32>
    %c0_3 = arith.constant 0 : index
    %c0_4 = arith.constant 0 : index
    %3 = vector.load %arg3[%c0_3, %c0_4] : memref<8x1xf32, #tpu.memory_space<vmem>>, vector<8x1xf32>
    %4 = vector.broadcast %3 : vector<8x1xf32> to vector<8x512xf32>
    %5 = arith.addf %2, %4 : vector<8x512xf32>
    %cst_5 = arith.constant 0.000000e+00 : f32
    %6 = vector.broadcast %cst_5 : f32 to vector<8x512xf32>
    %7 = arith.minimumf %5, %6 : vector<8x512xf32>
    %8 = math.exp %7 : vector<8x512xf32>
    %cst_6 = arith.constant 1.000000e+00 : f32
    %9 = vector.broadcast %cst_6 : f32 to vector<8x512xf32>
    %10 = arith.subf %8, %9 : vector<8x512xf32>
    %cst_7 = arith.constant 0.000000e+00 : f32
    %11 = vector.broadcast %cst_7 : f32 to vector<8x512xf32>
    %12 = arith.cmpf ogt, %5, %11 : vector<8x512xf32>
    %13 = arith.select %12, %5, %10 : vector<8x512xi1>, vector<8x512xf32>
    %c0_8 = arith.constant 0 : index
    %c0_9 = arith.constant 0 : index
    %14 = vector.load %arg4[%c0_8, %c0_9] : memref<8x512xf32, #tpu.memory_space<vmem>>, vector<8x512xf32>
    tpu.vector_store %arg4[%c0_8, %c0_9], %13 {strides = array<i32>} : memref<8x512xf32, #tpu.memory_space<vmem>>, vector<8x512xf32>,
    return
  }
  func.func @transform_0(%arg0: i32) -> (i32, i32) {
    %c0_i32 = arith.constant 0 : i32
    %c0_i32_0 = arith.constant 0 : i32
    return %c0_i32, %arg0 : i32, i32
  }
  func.func @transform_1(%arg0: i32) -> (i32, i32) {
    %c0_i32 = arith.constant 0 : i32
    %c0_i32_0 = arith.constant 0 : i32
    %c0_i32_1 = arith.constant 0 : i32
    return %c0_i32, %c0_i32_0 : i32, i32
  }
  func.func @transform_2(%arg0: i32) -> (i32, i32) {
    %c0_i32 = arith.constant 0 : i32
    %c0_i32_0 = arith.constant 0 : i32
    %c0_i32_1 = arith.constant 0 : i32
    return %c0_i32, %c0_i32_0 : i32, i32
  }
  func.func @transform_3(%arg0: i32) -> (i32, i32) {
    %c0_i32 = arith.constant 0 : i32
    %c0_i32_0 = arith.constant 0 : i32
    return %c0_i32, %arg0 : i32, i32
  }
}

</mosaic_0001>

<bundles_post_ra>
// kernel: tpu_custom_call.1
= control target key start
LH: loop header
LB: loop body
LE: loop exit
PB: predicated region body
PF: predicated region fallthrough
CT: control target
= control target key end

     0   :  { %8 = vsyncpa [#allocation3], 0  ;;  %s365_s0 = inlined_call_operand.hbm [shape: f32[36,512], index: 0, kind: input, shape index: {}]   ;;  %s366_s1 = inlined_call_operand.vmem [shape: f32[8,36], index: 1, kind: input, shape index: {}]   ;;  %s367_s2 = inlined_call_operand.vmem [shape: f32[8,1], index: 2, kind: input, shape index: {}]   ;;  %s368_s3 = inlined_call_operand.hbm [shape: f32[8,512], index: 3, kind: output, shape index: {}]  }
   0x1   :  { %9 = vsyncpa [#allocation4], 0  ;;  %s327_s12 = smov [#allocation2]  }
   0x2   :  { %s15_s13 = sshll.u32 %s327_s12, 4  ;;  %s16_s13 = int_to_ptr.vmem [resolvable:$true] %s15_s13 }
   0x3   :  { %s291_s14 = scalar_lea.vmem %s16_s13, 2560  ;;  %p296_p1 = scmp.lt.s32.totalorder %s16_s13, %s16_s13 }
   0x4   :  { %p292_p0 = scmp.ne.s32.totalorder %s16_s13, %s291_s14  ;;  %p297_p2 = scmp.lt.s32.totalorder %s291_s14, %s291_s14 }
   0x6   :  { %p298_p3 = por %p297_p2, %p296_p1 }
   0x8   :  { %p299_p4 = pnand %p298_p3, %p292_p0 }
   0xa   :  { %302 = shalt.err (!%p299_p4)
}
   0xb   :  { %s328_s15 = smov 512   ;;  %s329_s16 = smov 32  }
   0xc   :  { %21 = dma.hbm_to_vmem [thread:$0]  %s365_s0, 2560, %s16_s13, [#allocation3], %s328_s15, %s328_s15, %s329_s16  }
   0xd   :  { %323 = dma.done.wait [#allocation3], 2560  }
   0xe   :  { %324 = vsyncadd [#allocation3], 4294964736  ;;  %v330_v0 = vmov 0.0   ;;  %v331_v1 = vmov 0   ;;  %vm60_vm0 = vcmask 1043456   ;;  %v43_v6 = vld [vmem:[#allocation2 + $0x68] sm:$0xff] }
   0xf   :  { %137 = vmatprep.mubr.f32.mxu0 %v330_v0  ;;  %208 = vmatprep.mubr.f32.mxu1 %v330_v0  ;;  %v47_v2 = vld [vmem:[#allocation2 + $0x88] sm:$0xf]  ;;  %v49_v3 = vld [vmem:[#allocation2 + $0x98] sm:$0xf]  ;;  %v46_v4 = vld [vmem:[#allocation2 + $0x80] sm:$0xf] }
  0x10   :  { %274 = vset.pattern.permute.xlu0 %v331_v1  ;;  %258 = vmatprep.subr.msk.mxu0 %vm60_vm0, %v47_v2  ;;  %v48_v5 = vld [vmem:[#allocation2 + $0x90] sm:$0xf]  ;;  %v45_v7 = vld [vmem:[#allocation2 + $0x78] sm:$0xff]  ;;  %v42_v8 = vld [vmem:[#allocation2 + $0x60] sm:$0xff]  ;;  %vm56_vm1 = vcmask 293888  }
  0x11   :  { %261 = vmatprep.subr.msk.mxu1 %vm60_vm0, %v49_v3  ;;  %259 = vmatpush1.msk.msra.mxu0 %vm60_vm0, %v46_v4  ;;  %v44_v9 = vld [vmem:[#allocation2 + $0x70] sm:$0xff]  ;;  %v39_v10 = vld [vmem:[#allocation2 + $0x48] sm:$0xff]  ;;  %v41_v11 = vld [vmem:[#allocation2 + $0x58] sm:$0xff] }
  0x12   :  { %262 = vmatpush1.msk.msra.mxu1 %vm60_vm0, %v48_v5  ;;  %97 = vmatprep.subr.mxu0 %v43_v6  ;;  %v38_v12 = vld [vmem:[#allocation2 + $0x40] sm:$0xff]  ;;  %v40_v13 = vld [vmem:[#allocation2 + $0x50] sm:$0xff]  ;;  %v35_v14 = vld [vmem:[#allocation2 + $0x28] sm:$0xff] }
  0x13   :  { %168 = vmatprep.subr.mxu1 %v45_v7  ;;  %98 = vmatpush1.msra.mxu0 %v42_v8  ;;  %v37_v15 = vld [vmem:[#allocation2 + $0x38] sm:$0xff]  ;;  %v34_v16 = vld [vmem:[#allocation2 + $0x20] sm:$0xff]  ;;  %v36_v17 = vld [vmem:[#allocation2 + $0x30] sm:$0xff] }
  0x14   :  { %169 = vmatpush1.msra.mxu1 %v44_v9  ;;  %99 = vmatprep.subr.mxu0 %v39_v10  ;;  %v31_v18 = vld [vmem:[#allocation2 + $0x8] sm:$0xff]  ;;  %v33_v19 = vld [vmem:[#allocation2 + $0x18] sm:$0xff]  ;;  %v30_v20 = vld [vmem:[#allocation2] sm:$0xff] }
  0x15   :  { %170 = vmatprep.subr.mxu1 %v41_v11  ;;  %100 = vmatpush1.msra.mxu0 %v38_v12  ;;  %v32_v21 = vld [vmem:[#allocation2 + $0x10] sm:$0xff]  ;;  %v29_v22 = vld [vmem:[%s366_s1] sm:$0xff]  ;;  %s332_s1 = smov [#allocation5]  }
  0x16   :  { %171 = vmatpush1.msra.mxu1 %v40_v13  ;;  %101 = vmatprep.subr.mxu0 %v35_v14  ;;  %v50_v23 = vld [vmem:[%s367_s2] sm:$0xff]  ;;  %s249_s2 = sshll.u32 %s332_s1, 4  ;;  %s250_s2 = int_to_ptr.vmem [resolvable:$true] %s249_s2 }
  0x17   :  { %172 = vmatprep.subr.mxu1 %v37_v15  ;;  %102 = vmatpush1.msra.mxu0 %v34_v16  ;;  %s303_s22 = scalar_lea.vmem %s250_s2, 512  ;;  %p308_p6 = scmp.lt.s32.totalorder %s250_s2, %s250_s2 }
  0x18   :  { %173 = vmatpush1.msra.mxu1 %v36_v17  ;;  %103 = vmatprep.subr.mxu0 %v31_v18  ;;  %p304_p5 = scmp.ne.s32.totalorder %s250_s2, %s303_s22  ;;  %p309_p7 = scmp.lt.s32.totalorder %s303_s22, %s303_s22 }
  0x19   :  { %174 = vmatprep.subr.mxu1 %v33_v19  ;;  %104 = vmatpush1.msra.mxu0 %v30_v20 }
  0x1a   :  { %175 = vmatpush1.msra.mxu1 %v32_v21  ;;  %260 = vmatmul.mubr.msk.f32.vlgmr.msra.gmra.mxu0 %vm56_vm1, %v29_v22  ;;  %p310_p8 = por %p309_p7, %p308_p6 }
  0x1b   :  { %263 = vmatmul.mubr.msk.f32.vlgmr.msra.gmra.mxu1 %vm56_vm1, %v29_v22  ;;  %53 = vperm.xlu0 %274, %v50_v23  }
  0x1c   :  { %p311_p9 = pnand %p310_p8, %p304_p5 }
  0x96   :  { %v54_v24 = vpop.permute.xlu0 %53 }
  0xda   :  { %v139_v25 = vpop.f32.mrf.mxu0 }
  0xdb   :  { %v210_v26 = vpop.f32.mrf.mxu1  ;;  %v140_v27 = vadd.f32 %v139_v25, %v54_v24 }
  0xdc   :  { %v211_v28 = vadd.f32 %v210_v26, %v54_v24  ;;  %v141_v29 = vpop.f32.mrf.mxu0 }
  0xdd   :  { %v212_v30 = vpop.f32.mrf.mxu1  ;;  %v215_v31 = vmin.f32 %v140_v27, 0.0  ;;  %v142_v33 = vadd.f32 %v141_v29, %v54_v24  ;;  %vm231_vm2 = vcmp.gt.f32.partialorder %v140_v27, 0.0 }
  0xde   :  { %v217_v32 = vmin.f32 %v211_v28, 0.0  ;;  %v213_v34 = vadd.f32 %v212_v30, %v54_v24  ;;  %vm233_vm3 = vcmp.gt.f32.partialorder %v211_v28, 0.0 }
  0xdf   :  { %v219_v35 = vmul.f32 1.442695, %v215_v31  ;;  %v216_v37 = vmin.f32 %v142_v33, 0.0  ;;  %vm232_vm4 = vcmp.gt.f32.partialorder %v142_v33, 0.0 }
  0xe0   :  { %v223_v36 = vmul.f32 1.442695, %v217_v32  ;;  %v218_v38 = vmin.f32 %v213_v34, 0.0  ;;  %vm234_vm5 = vcmp.gt.f32.partialorder %v213_v34, 0.0 }
  0xe1   :  { %275 = vpow2.f32 %v219_v35  ;;  %v221_v39 = vmul.f32 1.442695, %v216_v37 }
  0xe2   :  { %277 = vpow2.f32 %v223_v36  ;;  %v225_v40 = vmul.f32 1.442695, %v218_v38 }
  0xe3   :  { %279 = vpow2.f32 %v221_v39 }
  0xe4   :  { %281 = vpow2.f32 %v225_v40 }
  0xee   :  { %v276_v41 = vpop.eup %275 }
  0xef   :  { %v278_v42 = vpop.eup %277  ;;  %v264_v43 = vadd.f32 -1.0, %v276_v41 }
  0xf0   :  { %v266_v44 = vadd.f32 -1.0, %v278_v42  ;;  %v280_v45 = vpop.eup %279 }
  0xf1   :  { %v235_v46 = vsel %vm231_vm2, %v140_v27, %v264_v43  ;;  %v282_v47 = vpop.eup %281  ;;  %v265_v49 = vadd.f32 -1.0, %v280_v45 }
  0xf2   :  { %239 = vst [vmem:[#allocation5] sm:$0xff] %v235_v46  ;;  %v237_v48 = vsel %vm233_vm3, %v211_v28, %v266_v44  ;;  %v267_v50 = vadd.f32 -1.0, %v282_v47 }
  0xf3   :  { %241 = vst [vmem:[#allocation5 + $0x10] sm:$0xff] %v237_v48  ;;  %v236_v51 = vsel %vm232_vm4, %v142_v33, %v265_v49 }
  0xf4   :  { %240 = vst [vmem:[#allocation5 + $0x8] sm:$0xff] %v236_v51  ;;  %v238_v52 = vsel %vm234_vm5, %v213_v34, %v267_v50 }
  0xf5   :  { %242 = vst [vmem:[#allocation5 + $0x18] sm:$0xff] %v238_v52 }
  0xf6   :  { %314 = shalt.err (!%p311_p9)
}
  0xf7   :  { %252 = dma.vmem_to_hbm [thread:$0]  %s250_s2, 512, %s368_s3, [#allocation4]  }
  0xf8   :  { %325 = dma.done.wait [#allocation4], 512  }
  0xf9   :  { %326 = vsyncadd [#allocation4], 4294966784 }
  0xfa   :  { %256 = vsyncpa [#allocation3], 1 }
  0xfb   :  { %257 = vsyncpa [#allocation4], 1 }

</bundles_post_ra>
